<compile_context>
chip_gen: v7x
topology: tpu7x:2x2x1
jax: 0.10.0
libtpu: 0.0.40
codegen_flags: <defaults>
</compile_context>

<pallas_src>
import functools

import jax
import jax.numpy as jnp
from jax.experimental import pallas as pl
from jax.experimental.pallas import tpu as pltpu


# ----------------------------------------------------------------------------
# Fused BasicBlock kernel (one image per grid step)
# ----------------------------------------------------------------------------
def basic_block_kernel(x_ref, wb1_ref, b1_ref, wb2_ref, b2_ref, o_ref,
                       xp_ref, midp_ref, *, H, W, C):
    """relu(bn2(conv2(relu(bn1(conv1(x))))) + x) for one NHWC image.

    Layouts (channels folded into the lane axis, column padding in weights):
      x_ref    : (1, H, W*C)        image, lane-dense
      xp_ref   : (H+2, W*C) scratch row-halo'd input (rows 0 / H+1 are zero)
      midp_ref : (H+2, W*C) scratch row-halo'd conv1 output (VMEM only)
      wb*_ref  : (3, W*C, W*C)      width-banded weights, BN scale folded,
                                    column zero-padding baked in
      b*_ref   : (1, W*C)           BN bias tiled to the lane-dense layout, f32
      o_ref    : (H, W*C)           lane-dense output
    """
    cd = xp_ref.dtype
    WC = W * C

    # ---- stage the row-halo'd input (dense, lane-aligned stores) -----------
    xp_ref[0:1, :] = jnp.zeros((1, WC), cd)
    xp_ref[H + 1:H + 2, :] = jnp.zeros((1, WC), cd)
    xp_ref[1:H + 1, :] = x_ref[0].astype(cd)

    # ---- conv1 (+ folded bn1 scale) + bias + relu ---------------------------
    acc1 = jnp.dot(xp_ref[0:H, :], wb1_ref[0],
                   preferred_element_type=jnp.float32)
    for dy in (1, 2):
        acc1 += jnp.dot(xp_ref[dy:dy + H, :], wb1_ref[dy],
                        preferred_element_type=jnp.float32)
    mid = jnp.maximum(acc1 + b1_ref[...], 0.0)               # f32, lane-dense

    # Intermediate activation stays in VMEM (row halo = conv2's zero padding).
    midp_ref[0:1, :] = jnp.zeros((1, WC), cd)
    midp_ref[H + 1:H + 2, :] = jnp.zeros((1, WC), cd)
    midp_ref[1:H + 1, :] = mid.astype(cd)

    # ---- conv2 (+ folded bn2 scale) + bias + residual + relu ----------------
    acc2 = jnp.dot(midp_ref[0:H, :], wb2_ref[0],
                   preferred_element_type=jnp.float32)
    for dy in (1, 2):
        acc2 += jnp.dot(midp_ref[dy:dy + H, :], wb2_ref[dy],
                        preferred_element_type=jnp.float32)
    res = x_ref[0].astype(jnp.float32)                       # identity branch
    y = jnp.maximum(acc2 + b2_ref[...] + res, 0.0)
    o_ref[...] = y.astype(o_ref.dtype)


# ----------------------------------------------------------------------------
# Wrappers
# ----------------------------------------------------------------------------
def basic_block_pallas(x_nhwc, params, *, compute_dtype=jnp.bfloat16):
    """Fused BasicBlock forward on an NHWC tensor."""
    N, H, W, C = x_nhwc.shape
    WC = W * C
    cd = compute_dtype

    # Lane-dense 2-D view; cast once so the per-image DMA (and the residual
    # read) move compute_dtype bytes.
    x2d = x_nhwc.reshape(N, H, WC).astype(cd)
    wb1 = params["wb1"].astype(cd)
    wb2 = params["wb2"].astype(cd)
    b1t = params["b1t"]                                      # f32
    b2t = params["b2t"]                                      # f32

    kernel = functools.partial(basic_block_kernel, H=H, W=W, C=C)
    out2d = pl.pallas_call(
        kernel,
        out_shape=jax.ShapeDtypeStruct((N * H, WC), x_nhwc.dtype),
        grid=(N,),
        in_specs=[
            pl.BlockSpec((1, H, WC), lambda n: (n, 0, 0)),      # image n
            # weights / biases: constant index maps -> DMAed once, resident
            pl.BlockSpec((3, WC, WC), lambda n: (0, 0, 0)),
            pl.BlockSpec((1, WC), lambda n: (0, 0)),
            pl.BlockSpec((3, WC, WC), lambda n: (0, 0, 0)),
            pl.BlockSpec((1, WC), lambda n: (0, 0)),
        ],
        out_specs=pl.BlockSpec((H, WC), lambda n: (n, 0)),      # lane-dense
        scratch_shapes=[
            pltpu.VMEM((H + 2, WC), cd),                        # row-halo'd x
            pltpu.VMEM((H + 2, WC), cd),                        # row-halo'd mid
        ],
        compiler_params=pltpu.CompilerParams(
            dimension_semantics=("parallel",),
            vmem_limit_bytes=32 * 1024 * 1024,
        ),
    )(x2d, wb1, b1t, wb2, b2t)
    return out2d.reshape(N, H, W, C)


def basic_block_forward(x_nchw, params, *, compute_dtype=jnp.bfloat16):
    """BasicBlock.forward (downsample=None, stride=1), PyTorch NCHW boundary."""
    x = jnp.transpose(x_nchw, (0, 2, 3, 1))                 # NCHW -> NHWC
    out = basic_block_pallas(x, params, compute_dtype=compute_dtype)
    return jnp.transpose(out, (0, 3, 1, 2))                 # NHWC -> NCHW


# ----------------------------------------------------------------------------
# Pure-JAX reference (NCHW, PyTorch eval-mode semantics)
# ----------------------------------------------------------------------------
def ref_forward(x_nchw, raw):
    dn = ("NCHW", "OIHW", "NCHW")

    def conv(x, w):
        return jax.lax.conv_general_dilated(
            x, w, window_strides=(1, 1), padding=((1, 1), (1, 1)),
            dimension_numbers=dn)

    def bn(x, g, b, m, v, eps=1e-5):
        s = g / jnp.sqrt(v + eps)
        return x * s[None, :, None, None] + (b - m * s)[None, :, None, None]

    out = jax.nn.relu(bn(conv(x_nchw, raw["w1"]), *raw["bn1"]))
    out = bn(conv(out, raw["w2"]), *raw["bn2"]) + x_nchw
    return jax.nn.relu(out)


# ----------------------------------------------------------------------------
# Parameter construction (deterministic; BN folded; width-banded weights with
# the column zero-padding baked in)
# ----------------------------------------------------------------------------
def make_params(key, cin, cout, W, eps=1e-5):
    assert cin == cout, "identity BasicBlock requires in_channel == out_channel"
    ks = jax.random.split(key, 10)
    raw = {
        "w1": jax.random.normal(ks[0], (cout, cin, 3, 3), jnp.float32) * 0.1,
        "w2": jax.random.normal(ks[1], (cout, cout, 3, 3), jnp.float32) * 0.1,
        "bn1": (jax.random.uniform(ks[2], (cout,), jnp.float32, 0.5, 1.5),   # gamma
                jax.random.normal(ks[3], (cout,), jnp.float32) * 0.1,        # beta
                jax.random.normal(ks[4], (cout,), jnp.float32) * 0.1,        # mean
                jax.random.uniform(ks[5], (cout,), jnp.float32, 0.5, 1.5)),  # var
        "bn2": (jax.random.uniform(ks[6], (cout,), jnp.float32, 0.5, 1.5),
                jax.random.normal(ks[7], (cout,), jnp.float32) * 0.1,
                jax.random.normal(ks[8], (cout,), jnp.float32) * 0.1,
                jax.random.uniform(ks[9], (cout,), jnp.float32, 0.5, 1.5)),
    }

    def fold(g, b, m, v):
        s = g / jnp.sqrt(v + eps)
        return s, b - m * s

    def banded(w_oihw, s):
        """Width-banded weights (3, W*Cin, W*Cout); BN scale + col padding folded.

        wb[dy][X*Cin + i, x*Cout + o] = w[o, i, dy, X-x+1] * s[o] if 0<=X-x+1<=2
        (out-of-range taps are simply absent, i.e. the 1-px column zero padding
        is baked into the weights).
        """
        I, O = w_oihw.shape[1], w_oihw.shape[0]
        wt = jnp.transpose(w_oihw, (2, 3, 1, 0)) * s[None, None, None, :]  # (dy,dx,i,o)
        band = jnp.stack(
            [jnp.eye(W, k=1 - dx, dtype=jnp.float32) for dx in range(3)])  # (dx, X, x)
        wb = jnp.einsum("dXx,ydio->yXixo", band, wt)          # (3, W, I, W, O)
        return wb.reshape(3, W * I, W * O)

    s1, c1 = fold(*raw["bn1"])
    s2, c2 = fold(*raw["bn2"])
    params = {
        "wb1": banded(raw["w1"], s1),
        "b1t": jnp.tile(c1[None, :], (1, W)),                # (1, W*Cout), f32
        "wb2": banded(raw["w2"], s2),
        "b2t": jnp.tile(c2[None, :], (1, W)),
    }
    return params, raw


# ----------------------------------------------------------------------------
if __name__ == "__main__":
    # C=8 so W*C = 128: input loads, intermediate handoff and output stores are
    # all natively 128-lane dense (stride=1, in_channel == out_channel block).
    N, C, H, W = 2, 8, 16, 16
    key = jax.random.PRNGKey(0)
    kx, kp = jax.random.split(key)
    x = jax.random.normal(kx, (N, C, H, W), jnp.float32)

    params, raw = make_params(kp, C, C, W)
    ref = jax.block_until_ready(ref_forward(x, raw))

    # Strict check with an f32 MXU path (verifies the fused-kernel structure,
    # the padding-in-weights band and the row-halo handling).
    out_f32 = jax.block_until_ready(
        basic_block_forward(x, params, compute_dtype=jnp.float32))
    assert out_f32.shape == (N, C, H, W), out_f32.shape
    assert jnp.allclose(out_f32, ref, atol=1e-4, rtol=1e-4), (
        float(jnp.max(jnp.abs(out_f32 - ref))))

    # Performance path: bf16 activations/weights (residual from the bf16 copy),
    # f32 accumulation and f32 bias/residual/relu tail.
    out_bf16 = jax.block_until_ready(
        basic_block_forward(x, params, compute_dtype=jnp.bfloat16))
    assert out_bf16.shape == (N, C, H, W), out_bf16.shape
    assert jnp.allclose(out_bf16, ref, atol=5e-2, rtol=5e-2), (
        float(jnp.max(jnp.abs(out_bf16 - ref))))

    print("KERNEL_OK")
</pallas_src>

<mosaic_0001>
module attributes {stable_mosaic.version = 11 : i64} {
  func.func @basic_block_kernel(%arg0: i32, %arg1: memref<1x16x128xf32, #tpu.memory_space<vmem>>, %arg2: memref<3x128x128xf32, #tpu.memory_space<vmem>>, %arg3: memref<1x128xf32, #tpu.memory_space<vmem>>, %arg4: memref<3x128x128xf32, #tpu.memory_space<vmem>>, %arg5: memref<1x128xf32, #tpu.memory_space<vmem>>, %arg6: memref<16x128xf32, #tpu.memory_space<vmem>>, %arg7: memref<18x128xf32, #tpu.memory_space<vmem>>, %arg8: memref<18x128xf32, #tpu.memory_space<vmem>>) attributes {dimension_semantics = [#tpu.dimension_semantics<parallel>], iteration_bounds = array<i64: 2>, scalar_prefetch = 0 : i64, scratch_operands = 2 : i64, tpu.core_type = #tpu.core_type<tc>, window_params = [{transform_indices = @transform_0, window_bounds = array<i64: 1, 16, 128>}, {pipeline_mode = #tpu.pipeline_mode<synchronous>, transform_indices = @transform_1, window_bounds = array<i64: 3, 128, 128>}, {pipeline_mode = #tpu.pipeline_mode<synchronous>, transform_indices = @transform_2, window_bounds = array<i64: 1, 128>}, {pipeline_mode = #tpu.pipeline_mode<synchronous>, transform_indices = @transform_3, window_bounds = array<i64: 3, 128, 128>}, {pipeline_mode = #tpu.pipeline_mode<synchronous>, transform_indices = @transform_4, window_bounds = array<i64: 1, 128>}, {transform_indices = @transform_5, window_bounds = array<i64: 16, 128>}]} {
    %cst = arith.constant 0.000000e+00 : f32
    %0 = vector.broadcast %cst : f32 to vector<1x128xf32>
    %c0 = arith.constant 0 : index
    %c0_0 = arith.constant 0 : index
    %1 = vector.load %arg7[%c0, %c0_0] : memref<18x128xf32, #tpu.memory_space<vmem>>, vector<1x128xf32>
    tpu.vector_store %arg7[%c0, %c0_0], %0 {strides = array<i32>} : memref<18x128xf32, #tpu.memory_space<vmem>>, vector<1x128xf32>,
    %cst_1 = arith.constant 0.000000e+00 : f32
    %2 = vector.broadcast %cst_1 : f32 to vector<1x128xf32>
    %c17 = arith.constant 17 : index
    %c0_2 = arith.constant 0 : index
    %3 = vector.load %arg7[%c17, %c0_2] : memref<18x128xf32, #tpu.memory_space<vmem>>, vector<1x128xf32>
    tpu.vector_store %arg7[%c17, %c0_2], %2 {strides = array<i32>} : memref<18x128xf32, #tpu.memory_space<vmem>>, vector<1x128xf32>,
    %c0_3 = arith.constant 0 : index
    %c0_4 = arith.constant 0 : index
    %c0_5 = arith.constant 0 : index
    %4 = vector.load %arg1[%c0_3, %c0_4, %c0_5] : memref<1x16x128xf32, #tpu.memory_space<vmem>>, vector<1x16x128xf32>
    %5 = vector.shape_cast %4 : vector<1x16x128xf32> to vector<16x128xf32>
    %c1 = arith.constant 1 : index
    %c0_6 = arith.constant 0 : index
    %6 = vector.load %arg7[%c1, %c0_6] : memref<18x128xf32, #tpu.memory_space<vmem>>, vector<16x128xf32>
    tpu.vector_store %arg7[%c1, %c0_6], %5 {strides = array<i32>} : memref<18x128xf32, #tpu.memory_space<vmem>>, vector<16x128xf32>,
    %c0_7 = arith.constant 0 : index
    %c0_8 = arith.constant 0 : index
    %7 = vector.load %arg7[%c0_7, %c0_8] : memref<18x128xf32, #tpu.memory_space<vmem>>, vector<16x128xf32>
    %c0_9 = arith.constant 0 : index
    %c0_10 = arith.constant 0 : index
    %c0_11 = arith.constant 0 : index
    %8 = vector.load %arg2[%c0_9, %c0_10, %c0_11] : memref<3x128x128xf32, #tpu.memory_space<vmem>>, vector<1x128x128xf32>
    %9 = vector.shape_cast %8 : vector<1x128x128xf32> to vector<128x128xf32>
    %cst_12 = arith.constant dense<0.000000e+00> : vector<16x128xf32>
    %10 = tpu.matmul %7, %9, %cst_12 {dimension_numbers = #tpu.dot_dimension_numbers<[1], [0], [0], [1], [0, 0, 1, 1], [], []>} : vector<16x128xf32>, vector<128x128xf32>, vector<16x128xf32> -> vector<16x128xf32>
    %c1_13 = arith.constant 1 : index
    %c0_14 = arith.constant 0 : index
    %11 = vector.load %arg7[%c1_13, %c0_14] : memref<18x128xf32, #tpu.memory_space<vmem>>, vector<16x128xf32>
    %c1_15 = arith.constant 1 : index
    %c0_16 = arith.constant 0 : index
    %c0_17 = arith.constant 0 : index
    %12 = vector.load %arg2[%c1_15, %c0_16, %c0_17] : memref<3x128x128xf32, #tpu.memory_space<vmem>>, vector<1x128x128xf32>
    %13 = vector.shape_cast %12 : vector<1x128x128xf32> to vector<128x128xf32>
    %cst_18 = arith.constant dense<0.000000e+00> : vector<16x128xf32>
    %14 = tpu.matmul %11, %13, %cst_18 {dimension_numbers = #tpu.dot_dimension_numbers<[1], [0], [0], [1], [0, 0, 1, 1], [], []>} : vector<16x128xf32>, vector<128x128xf32>, vector<16x128xf32> -> vector<16x128xf32>
    %15 = arith.addf %10, %14 : vector<16x128xf32>
    %c2 = arith.constant 2 : index
    %c0_19 = arith.constant 0 : index
    %16 = vector.load %arg7[%c2, %c0_19] : memref<18x128xf32, #tpu.memory_space<vmem>>, vector<16x128xf32>
    %c2_20 = arith.constant 2 : index
    %c0_21 = arith.constant 0 : index
    %c0_22 = arith.constant 0 : index
    %17 = vector.load %arg2[%c2_20, %c0_21, %c0_22] : memref<3x128x128xf32, #tpu.memory_space<vmem>>, vector<1x128x128xf32>
    %18 = vector.shape_cast %17 : vector<1x128x128xf32> to vector<128x128xf32>
    %cst_23 = arith.constant dense<0.000000e+00> : vector<16x128xf32>
    %19 = tpu.matmul %16, %18, %cst_23 {dimension_numbers = #tpu.dot_dimension_numbers<[1], [0], [0], [1], [0, 0, 1, 1], [], []>} : vector<16x128xf32>, vector<128x128xf32>, vector<16x128xf32> -> vector<16x128xf32>
    %20 = arith.addf %15, %19 : vector<16x128xf32>
    %c0_24 = arith.constant 0 : index
    %c0_25 = arith.constant 0 : index
    %21 = vector.load %arg3[%c0_24, %c0_25] : memref<1x128xf32, #tpu.memory_space<vmem>>, vector<1x128xf32>
    %22 = vector.broadcast %21 : vector<1x128xf32> to vector<16x128xf32>
    %23 = arith.addf %20, %22 : vector<16x128xf32>
    %cst_26 = arith.constant 0.000000e+00 : f32
    %24 = vector.broadcast %cst_26 : f32 to vector<16x128xf32>
    %25 = arith.maximumf %23, %24 : vector<16x128xf32>
    %cst_27 = arith.constant 0.000000e+00 : f32
    %26 = vector.broadcast %cst_27 : f32 to vector<1x128xf32>
    %c0_28 = arith.constant 0 : index
    %c0_29 = arith.constant 0 : index
    %27 = vector.load %arg8[%c0_28, %c0_29] : memref<18x128xf32, #tpu.memory_space<vmem>>, vector<1x128xf32>
    tpu.vector_store %arg8[%c0_28, %c0_29], %26 {strides = array<i32>} : memref<18x128xf32, #tpu.memory_space<vmem>>, vector<1x128xf32>,
    %cst_30 = arith.constant 0.000000e+00 : f32
    %28 = vector.broadcast %cst_30 : f32 to vector<1x128xf32>
    %c17_31 = arith.constant 17 : index
    %c0_32 = arith.constant 0 : index
    %29 = vector.load %arg8[%c17_31, %c0_32] : memref<18x128xf32, #tpu.memory_space<vmem>>, vector<1x128xf32>
    tpu.vector_store %arg8[%c17_31, %c0_32], %28 {strides = array<i32>} : memref<18x128xf32, #tpu.memory_space<vmem>>, vector<1x128xf32>,
    %c1_33 = arith.constant 1 : index
    %c0_34 = arith.constant 0 : index
    %30 = vector.load %arg8[%c1_33, %c0_34] : memref<18x128xf32, #tpu.memory_space<vmem>>, vector<16x128xf32>
    tpu.vector_store %arg8[%c1_33, %c0_34], %25 {strides = array<i32>} : memref<18x128xf32, #tpu.memory_space<vmem>>, vector<16x128xf32>,
    %c0_35 = arith.constant 0 : index
    %c0_36 = arith.constant 0 : index
    %31 = vector.load %arg8[%c0_35, %c0_36] : memref<18x128xf32, #tpu.memory_space<vmem>>, vector<16x128xf32>
    %c0_37 = arith.constant 0 : index
    %c0_38 = arith.constant 0 : index
    %c0_39 = arith.constant 0 : index
    %32 = vector.load %arg4[%c0_37, %c0_38, %c0_39] : memref<3x128x128xf32, #tpu.memory_space<vmem>>, vector<1x128x128xf32>
    %33 = vector.shape_cast %32 : vector<1x128x128xf32> to vector<128x128xf32>
    %cst_40 = arith.constant dense<0.000000e+00> : vector<16x128xf32>
    %34 = tpu.matmul %31, %33, %cst_40 {dimension_numbers = #tpu.dot_dimension_numbers<[1], [0], [0], [1], [0, 0, 1, 1], [], []>} : vector<16x128xf32>, vector<128x128xf32>, vector<16x128xf32> -> vector<16x128xf32>
    %c1_41 = arith.constant 1 : index
    %c0_42 = arith.constant 0 : index
    %35 = vector.load %arg8[%c1_41, %c0_42] : memref<18x128xf32, #tpu.memory_space<vmem>>, vector<16x128xf32>
    %c1_43 = arith.constant 1 : index
    %c0_44 = arith.constant 0 : index
    %c0_45 = arith.constant 0 : index
    %36 = vector.load %arg4[%c1_43, %c0_44, %c0_45] : memref<3x128x128xf32, #tpu.memory_space<vmem>>, vector<1x128x128xf32>
    %37 = vector.shape_cast %36 : vector<1x128x128xf32> to vector<128x128xf32>
    %cst_46 = arith.constant dense<0.000000e+00> : vector<16x128xf32>
    %38 = tpu.matmul %35, %37, %cst_46 {dimension_numbers = #tpu.dot_dimension_numbers<[1], [0], [0], [1], [0, 0, 1, 1], [], []>} : vector<16x128xf32>, vector<128x128xf32>, vector<16x128xf32> -> vector<16x128xf32>
    %39 = arith.addf %34, %38 : vector<16x128xf32>
    %c2_47 = arith.constant 2 : index
    %c0_48 = arith.constant 0 : index
    %40 = vector.load %arg8[%c2_47, %c0_48] : memref<18x128xf32, #tpu.memory_space<vmem>>, vector<16x128xf32>
    %c2_49 = arith.constant 2 : index
    %c0_50 = arith.constant 0 : index
    %c0_51 = arith.constant 0 : index
    %41 = vector.load %arg4[%c2_49, %c0_50, %c0_51] : memref<3x128x128xf32, #tpu.memory_space<vmem>>, vector<1x128x128xf32>
    %42 = vector.shape_cast %41 : vector<1x128x128xf32> to vector<128x128xf32>
    %cst_52 = arith.constant dense<0.000000e+00> : vector<16x128xf32>
    %43 = tpu.matmul %40, %42, %cst_52 {dimension_numbers = #tpu.dot_dimension_numbers<[1], [0], [0], [1], [0, 0, 1, 1], [], []>} : vector<16x128xf32>, vector<128x128xf32>, vector<16x128xf32> -> vector<16x128xf32>
    %44 = arith.addf %39, %43 : vector<16x128xf32>
    %c0_53 = arith.constant 0 : index
    %c0_54 = arith.constant 0 : index
    %c0_55 = arith.constant 0 : index
    %45 = vector.load %arg1[%c0_53, %c0_54, %c0_55] : memref<1x16x128xf32, #tpu.memory_space<vmem>>, vector<1x16x128xf32>
    %46 = vector.shape_cast %45 : vector<1x16x128xf32> to vector<16x128xf32>
    %c0_56 = arith.constant 0 : index
    %c0_57 = arith.constant 0 : index
    %47 = vector.load %arg5[%c0_56, %c0_57] : memref<1x128xf32, #tpu.memory_space<vmem>>, vector<1x128xf32>
    %48 = vector.broadcast %47 : vector<1x128xf32> to vector<16x128xf32>
    %49 = arith.addf %44, %48 : vector<16x128xf32>
    %50 = arith.addf %49, %46 : vector<16x128xf32>
    %cst_58 = arith.constant 0.000000e+00 : f32
    %51 = vector.broadcast %cst_58 : f32 to vector<16x128xf32>
    %52 = arith.maximumf %50, %51 : vector<16x128xf32>
    %c0_59 = arith.constant 0 : index
    %c0_60 = arith.constant 0 : index
    %53 = vector.load %arg6[%c0_59, %c0_60] : memref<16x128xf32, #tpu.memory_space<vmem>>, vector<16x128xf32>
    tpu.vector_store %arg6[%c0_59, %c0_60], %52 {strides = array<i32>} : memref<16x128xf32, #tpu.memory_space<vmem>>, vector<16x128xf32>,
    return
  }
  func.func @transform_0(%arg0: i32) -> (i32, i32, i32) {
    %c0_i32 = arith.constant 0 : i32
    %c0_i32_0 = arith.constant 0 : i32
    %c0_i32_1 = arith.constant 0 : i32
    return %arg0, %c0_i32, %c0_i32_0 : i32, i32, i32
  }
  func.func @transform_1(%arg0: i32) -> (i32, i32, i32) {
    %c0_i32 = arith.constant 0 : i32
    %c0_i32_0 = arith.constant 0 : i32
    %c0_i32_1 = arith.constant 0 : i32
    %c0_i32_2 = arith.constant 0 : i32
    return %c0_i32, %c0_i32_0, %c0_i32_1 : i32, i32, i32
  }
  func.func @transform_2(%arg0: i32) -> (i32, i32) {
    %c0_i32 = arith.constant 0 : i32
    %c0_i32_0 = arith.constant 0 : i32
    %c0_i32_1 = arith.constant 0 : i32
    return %c0_i32, %c0_i32_0 : i32, i32
  }
  func.func @transform_3(%arg0: i32) -> (i32, i32, i32) {
    %c0_i32 = arith.constant 0 : i32
    %c0_i32_0 = arith.constant 0 : i32
    %c0_i32_1 = arith.constant 0 : i32
    %c0_i32_2 = arith.constant 0 : i32
    return %c0_i32, %c0_i32_0, %c0_i32_1 : i32, i32, i32
  }
  func.func @transform_4(%arg0: i32) -> (i32, i32) {
    %c0_i32 = arith.constant 0 : i32
    %c0_i32_0 = arith.constant 0 : i32
    %c0_i32_1 = arith.constant 0 : i32
    return %c0_i32, %c0_i32_0 : i32, i32
  }
  func.func @transform_5(%arg0: i32) -> (i32, i32) {
    %c0_i32 = arith.constant 0 : i32
    %c0_i32_0 = arith.constant 0 : i32
    return %arg0, %c0_i32 : i32, i32
  }
}

</mosaic_0001>

<bundles_post_ra>
// kernel: tpu_custom_call.1
= control target key start
LH: loop header
LB: loop body
LE: loop exit
PB: predicated region body
PF: predicated region fallthrough
CT: control target
= control target key end

     0   :  { %10 = vsyncpa [#allocation5], 0  ;;  %s2055_s0 = inlined_call_operand.hbm [shape: f32[2,16,128], index: 0, kind: input, shape index: {}]   ;;  %s2056_s1 = inlined_call_operand.hbm [shape: f32[3,128,128], index: 1, kind: input, shape index: {}]   ;;  %s2057_s2 = inlined_call_operand.vmem [shape: f32[1,128], index: 2, kind: input, shape index: {}]   ;;  %s2058_s3 = inlined_call_operand.hbm [shape: f32[3,128,128], index: 3, kind: input, shape index: {}]   ;;  %s2059_s4 = inlined_call_operand.vmem [shape: f32[1,128], index: 4, kind: input, shape index: {}]   ;;  %s2060_s5 = inlined_call_operand.hbm [shape: f32[32,128], index: 5, kind: output, shape index: {}]  }
   0x1   :  { %12 = vsyncpa [#allocation5 + $0x1], 0 }
   0x2   :  { %13 = vsyncpa [#allocation8], 0 }
   0x3   :  { %14 = vsyncpa [#allocation6], 0 }
   0x4   :  { %16 = vsyncpa [#allocation6 + $0x1], 0  ;;  %s1792_s18 = smov 0   ;;  %s1794_s19 = smov 0  }
   0x5   :  { %s1796_s20 = smov 0   ;;  %s1798_s21 = smov 0  }
   0x6 LB: > { %s1813_s22 = sadd.s32 4294967295, %s1751_s21   ;;  %s983_s23 = sadd.s32 4294967294, %s1751_s21   ;;  %s1751_s21 = sphi %s1798_s21, %s2080_s21   ;;  %s1747_s20 = sphi %s1796_s20, %s2079_s20   ;;  %s1743_s19 = sphi %s1794_s19, %s2078_s19   ;;  %s1739_s18 = sphi %s1792_s18, %s2077_s18  }
   0x7   : > { %p42_p0 = scmp.ne.s32.totalorder %s1743_s19, %s1739_s18  ;;  %p2061_p1 = scmp.eq.s32.totalorder %s1813_s22, 0 }
   0x8   : > { %p156_p3 = scmp.eq.s32.totalorder %s983_s23, 1  ;;  %p984_p5 = scmp.ge.s32.totalorder %s1751_s21, 1 }
   0x9   : > { %p1822_p4 = por %p2061_p1, %p42_p0  ;;  %p163_p7 = scmp.lt.s32.totalorder %s1751_s21, 3 }
   0xa   : > { %p1827_p6 = por %p156_p3, %p42_p0  ;;  %s1753_s27 = smov [#allocation7]  }
   0xb   : > { %s2064_s24 = scalar_select %p1822_p4, 1, 0 }
   0xc   : > { %s2065_s25 = scalar_select %p1827_p6, 1, 0 }
   0xd   : > { %p1832_p8 = pnand %p984_p5, %p163_p7  ;;  %s175_s28 = sshll.u32 %s1753_s27, 4  ;;  %s1836_s28 = int_to_ptr.vmem [resolvable:$true] %s175_s28 }
   0xe   : > { %s1754_s30 = smov [#allocation9]   ;;  %s1595_s9 = scalar_lea.hbm %s2056_s1, 6144 }
   0xf   : > { %p1535_p9 = pneg %p1832_p8  ;;  %s191_s6 = sshll.u32 %s1754_s30, 4  ;;  %s1847_s6 = int_to_ptr.vmem [resolvable:$true] %s191_s6 }
  0x10   : > { %p1596_p12 = scmp.ne.s32.totalorder %s2056_s1, %s1595_s9  ;;  %p1602_p5 = scmp.lt.u32.totalorder %s1595_s9, %s2056_s1 }
  0x11   : > { %p1843_p11 = pnand %p1535_p9, %p2061_p1 }
  0x13   : > { %p1597_p13 = pneg %p1843_p11 }
  0x15   : > { %p1598_p0 = pnand %p1597_p13, %p1596_p12 }
  0x17   : > { %p1599_p3 = pneg %p1598_p0 }
  0x19   : > { %p1604_p7 = pnand %p1602_p5, %p1599_p3 }
  0x1b   : > { %1607 = shalt.err (!%p1604_p7)
}
  0x1c   : > { %s1608_s14 = scalar_lea.vmem %s1836_s28, 6144  ;;  %p1616_p2 = scmp.lt.s32.totalorder %s1836_s28, %s1836_s28 }
  0x1d   : > { %p1609_p9 = scmp.ne.s32.totalorder %s1836_s28, %s1608_s14  ;;  %p1617_p12 = scmp.lt.s32.totalorder %s1608_s14, %s1608_s14 }
  0x1f   : > { %p1611_p10 = pnand %p1609_p9, %p1597_p13  ;;  %p1618_p0 = por %p1617_p12, %p1616_p2 }
  0x21   : > { %p1612_p1 = pneg %p1611_p10 }
  0x23   : > { %p1619_p6 = pnand %p1618_p0, %p1612_p1 }
  0x25   : > { %1622 = shalt.err (!%p1619_p6)
}
  0x26   : > { %s1755_s15 = smov 128   ;;  %s1756_s16 = smov 8  }
  0x27   : > { %1538 = dma.hbm_to_vmem [thread:$0]  (!%p1843_p11), %s2056_s1, 6144, %s1836_s28, [#allocation8], %s1755_s15, %s1755_s15, %s1756_s16  }
  0x28   : > { %s1623_s7 = scalar_lea.hbm %s2058_s3, 6144 }
  0x29   : > { %p1624_p1 = scmp.ne.s32.totalorder %s2058_s3, %s1623_s7  ;;  %p1630_p10 = scmp.lt.u32.totalorder %s1623_s7, %s2058_s3 }
  0x2b   : > { %p1626_p2 = pnand %p1624_p1, %p1597_p13 }
  0x2d   : > { %p1627_p6 = pneg %p1626_p2 }
  0x2f   : > { %p1632_p3 = pnand %p1630_p10, %p1627_p6 }
  0x31   : > { %1635 = shalt.err (!%p1632_p3)
}
  0x32   : > { %s1636_s28 = scalar_lea.vmem %s1847_s6, 6144  ;;  %p1644_p12 = scmp.lt.s32.totalorder %s1847_s6, %s1847_s6 }
  0x33   : > { %p1637_p5 = scmp.ne.s32.totalorder %s1847_s6, %s1636_s28  ;;  %p1645_p0 = scmp.lt.s32.totalorder %s1636_s28, %s1636_s28 }
  0x35   : > { %p1639_p7 = pnand %p1637_p5, %p1597_p13  ;;  %p1646_p1 = por %p1645_p0, %p1644_p12 }
  0x37   : > { %p1640_p9 = pneg %p1639_p7 }
  0x39   : > { %p1647_p2 = pnand %p1646_p1, %p1640_p9 }
  0x3b   : > { %1650 = shalt.err (!%p1647_p2)
}
  0x3c   : > { %1541 = dma.hbm_to_vmem [thread:$0]  (!%p1843_p11), %s2058_s3, 6144, %s1847_s6, [#allocation8], %s1755_s15, %s1755_s15, %s1756_s16  }
  0x3d   : > { %s1908_s29 = sadd.s32 1, %s1751_s21   ;;  %s29_s14 = sadd.s32 1, %s1747_s20 }
  0x3e   : > { %s26_s17 = ssub.s32 %s1751_s21, %s1908_s29  ;;  %p36_p13 = scmp.ne.s32.totalorder %s1747_s20, %s1743_s19 }
  0x3f   : > { %p27_p6 = scmp.eq.s32.totalorder %s26_s17, 0  ;;  %p37_p10 = scmp.eq.s32.totalorder %s1751_s21, 0 }
  0x40   : > { %p2068_p3 = scmp.eq.s32.totalorder %s1813_s22, 1  ;;  %p1552_p7 = scmp.lt.s32.totalorder %s1751_s21, 2 }
  0x41   : > { %s1924_s27 = scalar_select %p27_p6, %s1747_s20, %s29_s14  }
  0x42   : > { %p1918_p5 = por %p2068_p3, %p36_p13  ;;  %p38_p9 = por %p37_p10, %p36_p13 }
  0x43   : > { %s208_s30 = sand.u32 1, %s1747_s20   ;;  %s1003_s6 = sshll.u32 %s1751_s21, 8 }
  0x44   : > { %s2069_s23 = scalar_select %p1918_p5, 1, 0 }
  0x45   : > { %s988_s7 = sshll.u32 %s208_s30, 4  ;;  %s1931_s10 = scalar_lea.hbm %s2055_s0, %s1003_s6 }
  0x46   : > { %s212_s11 = scalar_lea.vmem [#allocation4], %s988_s7  ;;  %p1935_p11 = pnand %p1552_p7, %p38_p9 }
  0x47   : > { %s219_s28 = sshll.u32 %s212_s11, 4  ;;  %s1939_s13 = scalar_lea.sflag [#allocation5], %s208_s30  ;;  %s1933_s28 = int_to_ptr.vmem [resolvable:$true] %s219_s28 }
  0x48   : > { %s1651_s14 = scalar_lea.hbm %s1931_s10, 256  ;;  %p1653_p0 = pneg %p1935_p11 }
  0x49   : > { %p1652_p12 = scmp.ne.s32.totalorder %s1931_s10, %s1651_s14  ;;  %s1656_s6 = scalar_lea.hbm %s2055_s0, 512 }
  0x4a   : > { %p1657_p13 = scmp.lt.u32.totalorder %s1931_s10, %s2055_s0  ;;  %p1658_p6 = scmp.lt.u32.totalorder %s1656_s6, %s1651_s14 }
  0x4b   : > { %p1654_p1 = pnand %p1653_p0, %p1652_p12  ;;  %p1660_p3 = scmp.lt.u32.totalorder %s1651_s14, %s1931_s10 }
  0x4c   : > { %p1659_p10 = por %p1658_p6, %p1657_p13 }
  0x4d   : > { %p1655_p2 = pneg %p1654_p1 }
  0x4e   : > { %p1661_p7 = por %p1660_p3, %p1659_p10 }
  0x50   : > { %p1662_p9 = pnand %p1661_p7, %p1655_p2 }
  0x52   : > { %1665 = shalt.err (!%p1662_p9)
}
  0x53   : > { %s1666_s30 = scalar_lea.vmem %s1933_s28, 256  ;;  %s1757_s11 = smov [#allocation4]  }
  0x54   : > { %p1667_p12 = scmp.ne.s32.totalorder %s1933_s28, %s1666_s30  ;;  %s1671_s17 = sshll.u32 %s1757_s11, 4  ;;  %s1672_s17 = int_to_ptr.vmem [resolvable:$false] %s1671_s17 }
  0x55   : > { %s1673_s7 = scalar_lea.vmem %s1672_s17, 512  ;;  %p1674_p4 = scmp.lt.s32.totalorder %s1933_s28, %s1672_s17 }
  0x56   : > { %p1669_p1 = pnand %p1667_p12, %p1653_p0  ;;  %p1675_p13 = scmp.lt.s32.totalorder %s1673_s7, %s1666_s30 }
  0x58   : > { %p1670_p5 = pneg %p1669_p1  ;;  %p1676_p6 = por %p1675_p13, %p1674_p4 }
  0x5a   : > { %p1677_p10 = pnand %p1676_p6, %p1670_p5 }
  0x5c   : > { %1680 = shalt.err (!%p1677_p10)
}
  0x5d   : > { %1545 = dma.hbm_to_vmem [thread:$0]  (!%p1935_p11), %s1931_s10, 256, %s1933_s28, %s1939_s13, %s1755_s15, %s1755_s15, %s1756_s16  }
  0x5e   : > { %231 = sbr.rel (%p1832_p8) target bundleno = 720 (0x2d0), region = 40  ;;  %s1973_s14 = sand.u32 (!%p1832_p8), 1, %s1743_s19  }
  0x5f   : > { %s992_s6 = sshll.u32 (!%p1832_p8), %s1973_s14, 4  ;;  %s234_s8 = scalar_lea.sflag (!%p1832_p8), [#allocation5], %s1973_s14 }
  0x60   : > { %s237_s12 = scalar_lea.vmem (!%p1832_p8), [#allocation4], %s992_s6  ;;  %p2071_p4 = scmp.ne.s32.totalorder (!%p1832_p8), %s2064_s24, 0 }
  0x65   : > { %1726 = dma.done.wait (%p2071_p4), %s234_s8, 256  }
  0x66   : > { %1728 = vsyncadd (%p2071_p4), %s234_s8, 4294967040  ;;  %p2072_p5 = scmp.eq.s32.totalorder %s1813_s22, 0 }
  0x68   : > { %1730 = dma.done.wait (%p2072_p5), [#allocation8], 12288   ;;  %p2073_p8 = pmov %p2072_p5 }
  0x69   : > { %v1758_v0 = vmov 0.0   ;;  %v300_v1 = vld [vmem:[#allocation7 + $0x80] sm:$0xff]  ;;  %v301_v2 = vld [vmem:[#allocation7 + $0x88] sm:$0xff]  ;;  %v302_v3 = vld [vmem:[#allocation7 + $0x90] sm:$0xff]  ;;  %s271_s10 = scalar_lea.vmem [#allocation10], %s992_s6  ;;  %s1004_s13 = sshll.u32 %s1813_s22, 8 }
  0x6a   : > { %1732 = vsyncadd (%p2073_p8), [#allocation8], 4294955008  ;;  %273 = vst [vmem:[#allocation2] sm:$0x1] %v1758_v0  ;;  %v1323_v4 = vpack.c.bf16 %v301_v2, %v300_v1  ;;  %v303_v5 = vld [vmem:[#allocation7 + $0x98] sm:$0xff]  ;;  %v304_v7 = vld [vmem:[#allocation7 + $0xa0] sm:$0xff]  ;;  %s2011_s11 = scalar_lea.hbm %s2060_s5, %s1004_s13 }
  0x6b   : > { %274 = vst [vmem:[#allocation2 + $0x11] sm:$0x1] %v1758_v0  ;;  %573 = vst [vmem:[#allocation3] sm:$0x1] %v1758_v0  ;;  %v1327_v6 = vpack.c.bf16 %v303_v5, %v302_v3  ;;  %v305_v8 = vld [vmem:[#allocation7 + $0xa8] sm:$0xff]  ;;  %v1987_v10 = vld [vmem:[%s237_s12] sm:$0xff] }
  0x6c   : > { %574 = vst [vmem:[#allocation3 + $0x11] sm:$0x1] %v1758_v0  ;;  %1324 = vmatprep.subr.bf16.mxu0 %v1323_v4  ;;  %v1331_v9 = vpack.c.bf16 %v305_v8, %v304_v7  ;;  %v306_v11 = vld [vmem:[#allocation7 + $0xb0] sm:$0xff]  ;;  %v307_v12 = vld [vmem:[#allocation7 + $0xb8] sm:$0xff]  ;;  %277 = vst [vmem:[#allocation2 + $0x1] sm:$0xff] %v1987_v10  ;;  %1145 = vmatprep.mubr.f32.mxu0 %v1987_v10  ;;  %s891_s28 = sshll.u32 %s271_s10, 4  ;;  %s2005_s28 = int_to_ptr.vmem [resolvable:$true] %s891_s28 }
  0x6d   : > { %1326 = vmatpush3.bf16.msra.mxu0 %v1323_v4  ;;  %v1991_v13 = vld [vmem:[%s237_s12 + $0x8] sm:$0xff]  ;;  %v1335_v14 = vpack.c.bf16 %v307_v12, %v306_v11  ;;  %v308_v15 = vld [vmem:[#allocation7 + $0xc0] sm:$0xff]  ;;  %v310_v18 = vld [vmem:[#allocation7 + $0xd0] sm:$0xff]  ;;  %s878_s17 = scalar_lea.sflag [#allocation6], %s1973_s14  ;;  %s1681_s22 = scalar_lea.vmem %s2005_s28, 256 }
  0x6e   : > { %1328 = vmatprep.subr.bf16.mxu0 %v1327_v6  ;;  %278 = vst [vmem:[#allocation2 + $0x9] sm:$0xff] %v1991_v13  ;;  %v309_v16 = vld [vmem:[#allocation7 + $0xc8] sm:$0xff]  ;;  %v311_v19 = vld [vmem:[#allocation7 + $0xd8] sm:$0xff]  ;;  %v312_v21 = vld [vmem:[#allocation7 + $0xe0] sm:$0xff]  ;;  %p1682_p11 = scmp.ne.s32.totalorder %s2005_s28, %s1681_s22  ;;  %p2074_p0 = scmp.ne.s32.totalorder %s2069_s23, 0 }
  0x6f   : > { %v1339_v17 = vpack.c.bf16 %v309_v16, %v308_v15  ;;  %v1343_v20 = vpack.c.bf16 %v311_v19, %v310_v18  ;;  %v313_v22 = vld [vmem:[#allocation7 + $0xe8] sm:$0xff]  ;;  %v598_v23 = vld [vmem:[#allocation9 + $0x80] sm:$0xff]  ;;  %v600_v25 = vld [vmem:[#allocation9 + $0x90] sm:$0xff]  ;;  %s1759_s7 = smov [#allocation10]  }
  0x70   : > { %v599_v24 = vld [vmem:[#allocation9 + $0x88] sm:$0xff]  ;;  %v601_v27 = vld [vmem:[#allocation9 + $0x98] sm:$0xff]  ;;  %v602_v29 = vld [vmem:[#allocation9 + $0xa0] sm:$0xff]  ;;  %v1347_v31 = vpack.c.bf16 %v313_v22, %v312_v21  ;;  %p1683_p2 = pnand %p1682_p11, %p2074_p0  ;;  %s1685_s6 = sshll.u32 %s1759_s7, 4  ;;  %s1686_s6 = int_to_ptr.vmem [resolvable:$false] %s1685_s6 }
  0x71   : > { %1330 = vmatpush3.bf16.msra.mxu0 %v1327_v6  ;;  %v1419_v26 = vpack.c.bf16 %v599_v24, %v598_v23  ;;  %v1423_v28 = vpack.c.bf16 %v601_v27, %v600_v25  ;;  %v603_v30 = vld [vmem:[#allocation9 + $0xa8] sm:$0xff]  ;;  %v314_v32 = vld [vmem:[#allocation7 + $0xf0] sm:$0xff]  ;;  %v315_v33 = vld [vmem:[#allocation7 + $0xf8] sm:$0xff]  ;;  %s1687_s8 = scalar_lea.vmem %s1686_s6, 512  ;;  %p1688_p7 = scmp.lt.s32.totalorder %s2005_s28, %s1686_s6 }
  0x72   : > { %1332 = vmatprep.subr.bf16.mxu0 %v1331_v9  ;;  %v1427_v34 = vpack.c.bf16 %v603_v30, %v602_v29  ;;  %v604_v35 = vld [vmem:[#allocation9 + $0xb0] sm:$0xff]  ;;  %v605_v36 = vld [vmem:[#allocation9 + $0xb8] sm:$0xff]  ;;  %v1351_v37 = vpack.c.bf16 %v315_v33, %v314_v32  ;;  %v281_v38 = vld [vmem:[#allocation7] sm:$0xff]  ;;  %p1684_p3 = pneg %p1683_p2  ;;  %p1689_p9 = scmp.lt.s32.totalorder %s1687_s8, %s1681_s22 }
  0x73   : > { %1420 = vmatprep.subr.bf16.mxu1 %v1419_v26  ;;  %v282_v39 = vld [vmem:[#allocation7 + $0x8] sm:$0xff]  ;;  %v1431_v40 = vpack.c.bf16 %v605_v36, %v604_v35  ;;  %v606_v41 = vld [vmem:[#allocation9 + $0xc0] sm:$0xff]  ;;  %v283_v44 = vld [vmem:[#allocation7 + $0x10] sm:$0xff] }
  0x74   : > { %1422 = vmatpush3.bf16.msra.mxu1 %v1419_v26  ;;  %v607_v42 = vld [vmem:[#allocation9 + $0xc8] sm:$0xff]  ;;  %v1355_v43 = vpack.c.bf16 %v282_v39, %v281_v38  ;;  %v284_v45 = vld [vmem:[#allocation7 + $0x18] sm:$0xff]  ;;  %v279_v48 = vld [vmem:[#allocation2] sm:$0xff]  ;;  %p1690_p12 = por %p1689_p9, %p1688_p7 }
  0x75   : > { %1334 = vmatpush3.bf16.msra.mxu0 %v1331_v9  ;;  %1424 = vmatprep.subr.bf16.mxu1 %v1423_v28  ;;  %v1435_v46 = vpack.c.bf16 %v607_v42, %v606_v41  ;;  %v1359_v47 = vpack.c.bf16 %v284_v45, %v283_v44  ;;  %v285_v49 = vld [vmem:[#allocation7 + $0x20] sm:$0xff]  ;;  %v286_v50 = vld [vmem:[#allocation7 + $0x28] sm:$0xff]  ;;  %v287_v52 = vld [vmem:[#allocation7 + $0x30] sm:$0xff] }
  0x76   : > { %1336 = vmatprep.subr.bf16.mxu0 %v1335_v14  ;;  %v1363_v51 = vpack.c.bf16 %v286_v50, %v285_v49  ;;  %v288_v53 = vld [vmem:[#allocation7 + $0x38] sm:$0xff]  ;;  %v289_v55 = vld [vmem:[#allocation7 + $0x40] sm:$0xff]  ;;  %v290_v56 = vld [vmem:[#allocation7 + $0x48] sm:$0xff]  ;;  %p1691_p1 = pnand %p1690_p12, %p1684_p3 }
  0x77   : > { %v1367_v54 = vpack.c.bf16 %v288_v53, %v287_v52  ;;  %v1371_v57 = vpack.c.bf16 %v290_v56, %v289_v55  ;;  %v291_v58 = vld [vmem:[#allocation7 + $0x50] sm:$0xff]  ;;  %v292_v59 = vld [vmem:[#allocation7 + $0x58] sm:$0xff]  ;;  %v293_v61 = vld [vmem:[#allocation7 + $0x60] sm:$0xff] }
  0x78   : > { %1426 = vmatpush3.bf16.msra.mxu1 %v1423_v28  ;;  %v1375_v60 = vpack.c.bf16 %v292_v59, %v291_v58  ;;  %v294_v62 = vld [vmem:[#allocation7 + $0x68] sm:$0xff]  ;;  %v295_v0 = vld [vmem:[#allocation7 + $0x70] sm:$0xff]  ;;  %v296_v1 = vld [vmem:[#allocation7 + $0x78] sm:$0xff] }
  0x79   : > { %1338 = vmatpush3.bf16.msra.mxu0 %v1335_v14  ;;  %1428 = vmatprep.subr.bf16.mxu1 %v1427_v34  ;;  %v1379_v63 = vpack.c.bf16 %v294_v62, %v293_v61  ;;  %v1383_v2 = vpack.c.bf16 %v296_v1, %v295_v0  ;;  %v469_v3 = vld [vmem:[#allocation7 + $0x100] sm:$0xff]  ;;  %v470_v4 = vld [vmem:[#allocation7 + $0x108] sm:$0xff]  ;;  %v471_v6 = vld [vmem:[#allocation7 + $0x110] sm:$0xff] }
  0x7a   : > { %1340 = vmatprep.subr.bf16.mxu0 %v1339_v17  ;;  %v1387_v5 = vpack.c.bf16 %v470_v4, %v469_v3  ;;  %v472_v7 = vld [vmem:[#allocation7 + $0x118] sm:$0xff]  ;;  %v473_v12 = vld [vmem:[#allocation7 + $0x120] sm:$0xff]  ;;  %v474_v14 = vld [vmem:[#allocation7 + $0x128] sm:$0xff] }
  0x7b   : > { %v280_v8 = vld [vmem:[#allocation2 + $0x8] sm:$0xff]  ;;  %v1391_v9 = vpack.c.bf16 %v472_v7, %v471_v6  ;;  %v1395_v15 = vpack.c.bf16 %v474_v14, %v473_v12  ;;  %v475_v16 = vld [vmem:[#allocation7 + $0x130] sm:$0xff]  ;;  %v477_v19 = vld [vmem:[#allocation7 + $0x140] sm:$0xff] }
  0x7c   : > { %1430 = vmatpush3.bf16.msra.mxu1 %v1427_v34  ;;  %v466_v11 = vld [vmem:[#allocation2 + $0x2] sm:$0xff]  ;;  %v481_v25 = vld [vmem:[#allocation7 + $0x160] sm:$0xff]  ;;  %v482_v26 = vld [vmem:[#allocation7 + $0x168] sm:$0xff] }
  0x7d   : > { %1342 = vmatpush3.bf16.msra.mxu0 %v1339_v17  ;;  %1432 = vmatprep.subr.bf16.mxu1 %v1431_v40  ;;  %v476_v17 = vld [vmem:[#allocation7 + $0x138] sm:$0xff]  ;;  %v479_v22 = vld [vmem:[#allocation7 + $0x150] sm:$0xff]  ;;  %v1411_v27 = vpack.c.bf16 %v482_v26, %v481_v25  ;;  %v610_v35 = vld [vmem:[#allocation9 + $0xe0] sm:$0xff] }
  0x7e   : > { %1344 = vmatprep.subr.bf16.mxu0 %v1343_v20  ;;  %v1399_v18 = vpack.c.bf16 %v476_v17, %v475_v16  ;;  %v480_v23 = vld [vmem:[#allocation7 + $0x158] sm:$0xff]  ;;  %v483_v28 = vld [vmem:[#allocation7 + $0x170] sm:$0xff]  ;;  %v611_v36 = vld [vmem:[#allocation9 + $0xe8] sm:$0xff] }
  0x7f   : > { %v1407_v24 = vpack.c.bf16 %v480_v23, %v479_v22  ;;  %v484_v29 = vld [vmem:[#allocation7 + $0x178] sm:$0xff]  ;;  %v608_v32 = vld [vmem:[#allocation9 + $0xd0] sm:$0xff]  ;;  %v579_v41 = vld [vmem:[#allocation9] sm:$0xff] }
  0x80   : > { %1434 = vmatpush3.bf16.msra.mxu1 %v1431_v40  ;;  %v1415_v30 = vpack.c.bf16 %v484_v29, %v483_v28  ;;  %v609_v33 = vld [vmem:[#allocation9 + $0xd8] sm:$0xff]  ;;  %v612_v38 = vld [vmem:[#allocation9 + $0xf0] sm:$0xff]  ;;  %v580_v42 = vld [vmem:[#allocation9 + $0x8] sm:$0xff] }
  0x81   : > { %1346 = vmatpush3.bf16.msra.mxu0 %v1343_v20  ;;  %1436 = vmatprep.subr.bf16.mxu1 %v1435_v46  ;;  %v478_v20 = vld [vmem:[#allocation7 + $0x148] sm:$0xff]  ;;  %v1439_v34 = vpack.c.bf16 %v609_v33, %v608_v32  ;;  %v613_v39 = vld [vmem:[#allocation9 + $0xf8] sm:$0xff]  ;;  %v996_v44 = vld [vmem:[%s2057_s2] ss:$0 sm:$0xff] }
  0x82   : > { %1348 = vmatprep.subr.bf16.mxu0 %v1347_v31  ;;  %v1403_v21 = vpack.c.bf16 %v478_v20, %v477_v19  ;;  %v1447_v40 = vpack.c.bf16 %v613_v39, %v612_v38  ;;  %v581_v49 = vld [vmem:[#allocation9 + $0x10] sm:$0xff]  ;;  %v582_v50 = vld [vmem:[#allocation9 + $0x18] sm:$0xff]  ;;  %v584_v55 = vld [vmem:[#allocation9 + $0x28] sm:$0xff] }
  0x83   : > { %v1455_v53 = vpack.c.bf16 %v582_v50, %v581_v49  ;;  %v586_v58 = vld [vmem:[#allocation9 + $0x38] sm:$0xff]  ;;  %v587_v61 = vld [vmem:[#allocation9 + $0x40] sm:$0xff]  ;;  %v588_v62 = vld [vmem:[#allocation9 + $0x48] sm:$0xff] }
  0x84   : > { %1438 = vmatpush3.bf16.msra.mxu1 %v1435_v46  ;;  %v589_v0 = vld [vmem:[#allocation9 + $0x50] sm:$0xff]  ;;  %v590_v1 = vld [vmem:[#allocation9 + $0x58] sm:$0xff]  ;;  %v591_v3 = vld [vmem:[#allocation9 + $0x60] sm:$0xff] }
  0x85   : > { %1350 = vmatpush3.bf16.msra.mxu0 %v1347_v31  ;;  %v467_v31 = vld [vmem:[#allocation2 + $0xa] sm:$0xff]  ;;  %1440 = vmatprep.subr.bf16.mxu1 %v1439_v34  ;;  %v592_v4 = vld [vmem:[#allocation9 + $0x68] sm:$0xff]  ;;  %v593_v6 = vld [vmem:[#allocation9 + $0x70] sm:$0xff] }
  0x86   : > { %1352 = vmatprep.subr.bf16.mxu0 %v1351_v37  ;;  %v594_v7 = vld [vmem:[#allocation9 + $0x78] sm:$0xff]  ;;  %v769_v14 = vld [vmem:[#allocation9 + $0x110] sm:$0xff]  ;;  %v772_v19 = vld [vmem:[#allocation9 + $0x128] sm:$0xff] }
  0x87   : > { %v773_v22 = vld [vmem:[#allocation9 + $0x130] sm:$0xff]  ;;  %v774_v23 = vld [vmem:[#allocation9 + $0x138] sm:$0xff]  ;;  %v775_v25 = vld [vmem:[#allocation9 + $0x140] sm:$0xff] }
  0x88   : > { %1442 = vmatpush3.bf16.msra.mxu1 %v1439_v34  ;;  %v776_v26 = vld [vmem:[#allocation9 + $0x148] sm:$0xff]  ;;  %v777_v28 = vld [vmem:[#allocation9 + $0x150] sm:$0xff]  ;;  %v778_v29 = vld [vmem:[#allocation9 + $0x158] sm:$0xff] }
  0x89   : > { %1354 = vmatpush3.bf16.msra.mxu0 %v1351_v37  ;;  %v1443_v37 = vpack.c.bf16 %v611_v36, %v610_v35  ;;  %v780_v32 = vld [vmem:[#allocation9 + $0x168] sm:$0xff]  ;;  %v781_v34 = vld [vmem:[#allocation9 + $0x170] sm:$0xff]  ;;  %v782_v35 = vld [vmem:[#allocation9 + $0x178] sm:$0xff] }
  0x8a   : > { %1356 = vmatprep.subr.bf16.mxu0 %v1355_v43  ;;  %v1511_v36 = vpack.c.bf16 %v782_v35, %v781_v34  ;;  %v997_v38 = vld [vmem:[%s2059_s4] ss:$0 sm:$0xff] }
  0x8b   : > { %1444 = vmatprep.subr.bf16.mxu1 %v1443_v37 }
  0x8c   : > { %1146 = vmatmul.mubr.f32.vlgmr.msra.gmra.mrb[0].mxu0 %v1991_v13  ;;  %1446 = vmatpush3.bf16.msra.mxu1 %v1443_v37 }
  0x8d   : > { %1358 = vmatpush3.bf16.msra.mxu0 %v1355_v43  ;;  %1180 = vmatprep.mubr.f32.mxu0 %v279_v48  ;;  %v1451_v43 = vpack.c.bf16 %v580_v42, %v579_v41 }
  0x8e   : > { %1360 = vmatprep.subr.bf16.mxu0 %v1359_v47  ;;  %1448 = vmatprep.subr.bf16.mxu1 %v1447_v40 }
  0x90   : > { %1450 = vmatpush3.bf16.msra.mxu1 %v1447_v40 }
  0x91   : > { %1362 = vmatpush3.bf16.msra.mxu0 %v1359_v47  ;;  %1452 = vmatprep.subr.bf16.mxu1 %v1451_v43 }
  0x92   : > { %1364 = vmatprep.subr.bf16.mxu0 %v1363_v51 }
  0x95   : > { %1366 = vmatpush3.bf16.msra.mxu0 %v1363_v51 }
  0x96   : > { %1368 = vmatprep.subr.bf16.mxu0 %v1367_v54 }
  0x99   : > { %1370 = vmatpush3.bf16.msra.mxu0 %v1367_v54  ;;  %v583_v54 = vld [vmem:[#allocation9 + $0x20] sm:$0xff] }
  0x9a   : > { %1372 = vmatprep.subr.bf16.mxu0 %v1371_v57  ;;  %v1459_v56 = vpack.c.bf16 %v584_v55, %v583_v54 }
  0x9d   : > { %1374 = vmatpush3.bf16.msra.mxu0 %v1371_v57  ;;  %v585_v57 = vld [vmem:[#allocation9 + $0x30] sm:$0xff] }
  0x9e   : > { %1376 = vmatprep.subr.bf16.mxu0 %v1375_v60 }
  0xa1   : > { %1378 = vmatpush3.bf16.msra.mxu0 %v1375_v60  ;;  %v1463_v60 = vpack.c.bf16 %v586_v58, %v585_v57 }
  0xa2   : > { %1380 = vmatprep.subr.bf16.mxu0 %v1379_v63 }
  0xa5   : > { %1382 = vmatpush3.bf16.msra.mxu0 %v1379_v63  ;;  %v1467_v63 = vpack.c.bf16 %v588_v62, %v587_v61 }
  0xa6   : > { %1384 = vmatprep.subr.bf16.mxu0 %v1383_v2 }
  0xa9   : > { %1386 = vmatpush3.bf16.msra.mxu0 %v1383_v2  ;;  %v1471_v2 = vpack.c.bf16 %v590_v1, %v589_v0 }
  0xaa   : > { %1388 = vmatprep.subr.bf16.mxu0 %v1387_v5 }
  0xac   : > { %1181 = vmatmul.mubr.f32.vlgmr.msra.gmra.mrb[0].mxu0 %v280_v8  ;;  %v1479_v8 = vpack.c.bf16 %v594_v7, %v593_v6 }
  0xad   : > { %1390 = vmatpush3.bf16.msra.mxu0 %v1387_v5  ;;  %1215 = vmatprep.mubr.f32.mxu0 %v466_v11  ;;  %v1475_v5 = vpack.c.bf16 %v592_v4, %v591_v3  ;;  %v768_v11 = vld [vmem:[#allocation9 + $0x108] sm:$0xff] }
  0xae   : > { %1392 = vmatprep.subr.bf16.mxu0 %v1391_v9 }
  0xb1   : > { %1394 = vmatpush3.bf16.msra.mxu0 %v1391_v9  ;;  %v767_v9 = vld [vmem:[#allocation9 + $0x100] sm:$0xff] }
  0xb2   : > { %1396 = vmatprep.subr.bf16.mxu0 %v1395_v15  ;;  %v1483_v12 = vpack.c.bf16 %v768_v11, %v767_v9 }
  0xb5   : > { %1398 = vmatpush3.bf16.msra.mxu0 %v1395_v15  ;;  %v770_v15 = vld [vmem:[#allocation9 + $0x118] sm:$0xff] }
  0xb6   : > { %1400 = vmatprep.subr.bf16.mxu0 %v1399_v18  ;;  %v1487_v16 = vpack.c.bf16 %v770_v15, %v769_v14 }
  0xb9   : > { %1402 = vmatpush3.bf16.msra.mxu0 %v1399_v18  ;;  %v771_v18 = vld [vmem:[#allocation9 + $0x120] sm:$0xff] }
  0xba   : > { %1404 = vmatprep.subr.bf16.mxu0 %v1403_v21 }
  0xbd   : > { %1406 = vmatpush3.bf16.msra.mxu0 %v1403_v21  ;;  %v1491_v21 = vpack.c.bf16 %v772_v19, %v771_v18 }
  0xbe   : > { %1408 = vmatprep.subr.bf16.mxu0 %v1407_v24 }
  0xc1   : > { %1410 = vmatpush3.bf16.msra.mxu0 %v1407_v24  ;;  %v1495_v24 = vpack.c.bf16 %v774_v23, %v773_v22 }
  0xc2   : > { %1412 = vmatprep.subr.bf16.mxu0 %v1411_v27 }
  0xc5   : > { %1414 = vmatpush3.bf16.msra.mxu0 %v1411_v27  ;;  %v1499_v27 = vpack.c.bf16 %v776_v26, %v775_v25 }
  0xc6   : > { %1416 = vmatprep.subr.bf16.mxu0 %v1415_v30 }
  0xc9   : > { %1418 = vmatpush3.bf16.msra.mxu0 %v1415_v30  ;;  %v1503_v30 = vpack.c.bf16 %v778_v29, %v777_v28 }
  0xcc   : > { %1216 = vmatmul.mubr.f32.vlgmr.msra.gmra.mrb[0].mxu0 %v467_v31  ;;  %v779_v31 = vld [vmem:[#allocation9 + $0x160] sm:$0xff] }
  0xcd   : > { %v1507_v33 = vpack.c.bf16 %v780_v32, %v779_v31 }
 0x19f   : > { %v1217_v45 = vpop.f32.mrb[0].mxu0 }
 0x1a0   : > { %v570_v46 = vadd.f32 %v1217_v45, %v996_v44  ;;  %v551_v47 = vpop.f32.mrb[1].mxu0 }
 0x1a1   : > { %v569_v48 = vadd.f32 %v996_v44, %v551_v47 }
 0x1a2   : > { %v572_v51 = vmax.f32 %v570_v46, 0.0 }
 0x1a3   : > { %v571_v52 = vmax.f32 %v569_v48, 0.0 }
 0x1a4   : > { %576 = vst [vmem:[#allocation3 + $0x9] sm:$0xff] %v572_v51 }
 0x1a5   : > { %575 = vst [vmem:[#allocation3 + $0x1] sm:$0xff] %v571_v52  ;;  %1250 = vmatprep.mubr.f32.mxu1 %v571_v52 }
 0x1a6   : > { %1251 = vmatmul.mubr.f32.vlgmr.msra.gmra.mrb[0].mxu1 %v572_v51 }
 0x1a7   : > { %1454 = vmatpush3.bf16.msra.mxu1 %v1451_v43 }
 0x1a8   : > { %1456 = vmatprep.subr.bf16.mxu1 %v1455_v53 }
 0x1ab   : > { %1458 = vmatpush3.bf16.msra.mxu1 %v1455_v53  ;;  %v765_v37 = vld [vmem:[#allocation3 + $0xa] sm:$0xff] }
 0x1ac   : > { %v577_v59 = vld [vmem:[#allocation3] sm:$0xff]  ;;  %1460 = vmatprep.subr.bf16.mxu1 %v1459_v56  ;;  %v578_v17 = vld [vmem:[#allocation3 + $0x8] sm:$0xff] }
 0x1ad   : > { %1285 = vmatprep.mubr.f32.mxu1 %v577_v59  ;;  %v764_v20 = vld [vmem:[#allocation3 + $0x2] sm:$0xff] }
 0x1af   : > { %1462 = vmatpush3.bf16.msra.mxu1 %v1459_v56 }
 0x1b0   : > { %1464 = vmatprep.subr.bf16.mxu1 %v1463_v60 }
 0x1b3   : > { %1466 = vmatpush3.bf16.msra.mxu1 %v1463_v60 }
 0x1b4   : > { %1468 = vmatprep.subr.bf16.mxu1 %v1467_v63 }
 0x1b7   : > { %1470 = vmatpush3.bf16.msra.mxu1 %v1467_v63 }
 0x1b8   : > { %1472 = vmatprep.subr.bf16.mxu1 %v1471_v2 }
 0x1bb   : > { %1474 = vmatpush3.bf16.msra.mxu1 %v1471_v2 }
 0x1bc   : > { %1476 = vmatprep.subr.bf16.mxu1 %v1475_v5 }
 0x1bf   : > { %1478 = vmatpush3.bf16.msra.mxu1 %v1475_v5 }
 0x1c0   : > { %1480 = vmatprep.subr.bf16.mxu1 %v1479_v8 }
 0x1c3   : > { %1482 = vmatpush3.bf16.msra.mxu1 %v1479_v8 }
 0x1c4   : > { %1484 = vmatprep.subr.bf16.mxu1 %v1483_v12 }
 0x1c6   : > { %1286 = vmatmul.mubr.f32.vlgmr.msra.gmra.mrb[0].mxu1 %v578_v17 }
 0x1c7   : > { %1486 = vmatpush3.bf16.msra.mxu1 %v1483_v12  ;;  %1320 = vmatprep.mubr.f32.mxu1 %v764_v20 }
 0x1c8   : > { %1488 = vmatprep.subr.bf16.mxu1 %v1487_v16 }
 0x1cb   : > { %1490 = vmatpush3.bf16.msra.mxu1 %v1487_v16 }
 0x1cc   : > { %1492 = vmatprep.subr.bf16.mxu1 %v1491_v21 }
 0x1cf   : > { %1494 = vmatpush3.bf16.msra.mxu1 %v1491_v21 }
 0x1d0   : > { %1496 = vmatprep.subr.bf16.mxu1 %v1495_v24 }
 0x1d3   : > { %1498 = vmatpush3.bf16.msra.mxu1 %v1495_v24 }
 0x1d4   : > { %1500 = vmatprep.subr.bf16.mxu1 %v1499_v27 }
 0x1d7   : > { %1502 = vmatpush3.bf16.msra.mxu1 %v1499_v27 }
 0x1d8   : > { %1504 = vmatprep.subr.bf16.mxu1 %v1503_v30 }
 0x1db   : > { %1506 = vmatpush3.bf16.msra.mxu1 %v1503_v30 }
 0x1dc   : > { %1508 = vmatprep.subr.bf16.mxu1 %v1507_v33 }
 0x1df   : > { %1510 = vmatpush3.bf16.msra.mxu1 %v1507_v33 }
 0x1e0   : > { %1512 = vmatprep.subr.bf16.mxu1 %v1511_v36 }
 0x1e3   : > { %1514 = vmatpush3.bf16.msra.mxu1 %v1511_v36 }
 0x1e6   : > { %1321 = vmatmul.mubr.f32.vlgmr.msra.gmra.mrb[0].mxu1 %v765_v37 }
 0x2b9   : > { %v1322_v39 = vpop.f32.mrb[0].mxu1 }
 0x2ba   : > { %v870_v40 = vadd.f32 %v1322_v39, %v997_v38  ;;  %v849_v41 = vpop.f32.mrb[1].mxu1 }
 0x2bb   : > { %v869_v42 = vadd.f32 %v997_v38, %v849_v41 }
 0x2bc   : > { %v872_v43 = vadd.f32 %v870_v40, %v1991_v13 }
 0x2bd   : > { %v871_v44 = vadd.f32 %v869_v42, %v1987_v10 }
 0x2be   : > { %v874_v45 = vmax.f32 %v872_v43, 0.0 }
 0x2bf   : > { %v873_v46 = vmax.f32 %v871_v44, 0.0 }
 0x2c0   : > { %876 = vst [vmem:[%s271_s10 + $0x8] sm:$0xff] %v874_v45 }
 0x2c1   : > { %875 = vst [vmem:[%s271_s10] sm:$0xff] %v873_v46 }
 0x2c2   : > { %1694 = shalt.err (!%p1691_p1)
}
 0x2c3   : > { %s1695_s12 = scalar_lea.hbm %s2011_s11, 256  ;;  %s1699_s15 = scalar_lea.hbm %s2060_s5, 512 }
 0x2c4   : > { %p1696_p13 = scmp.ne.s32.totalorder %s2011_s11, %s1695_s12  ;;  %p1700_p4 = scmp.lt.u32.totalorder %s2011_s11, %s2060_s5 }
 0x2c5   : > { %p1701_p5 = scmp.lt.u32.totalorder %s1699_s15, %s1695_s12  ;;  %p1703_p11 = scmp.lt.u32.totalorder %s1695_s12, %s2011_s11 }
 0x2c6   : > { %p1697_p6 = pnand %p1696_p13, %p2074_p0 }
 0x2c7   : > { %p1702_p8 = por %p1701_p5, %p1700_p4 }
 0x2c8   : > { %p1698_p10 = pneg %p1697_p6 }
 0x2c9   : > { %p1704_p2 = por %p1703_p11, %p1702_p8 }
 0x2cb   : > { %p1705_p3 = pnand %p1704_p2, %p1698_p10 }
 0x2cd   : > { %1708 = shalt.err (!%p1705_p3)
}
 0x2ce   : > { %s1760_s13 = smov 128   ;;  %s1761_s9 = smov 8  }
 0x2cf   : > { %1533 = dma.vmem_to_hbm [thread:$0]  (%p2074_p0), %s2005_s28, 256, %s2011_s11, %s878_s17, %s1760_s13, %s1760_s13, %s1761_s9  }
 0x2d0 PF: > { %s906_s30 = sand.u32 1, %s1739_s18   ;;  %p2075_p7 = scmp.ne.s32.totalorder %s2065_s25, 0 }
 0x2d1   : > { %p2076_p9 = scmp.ge.s32.totalorder %s1751_s21, 2  ;;  %s907_s22 = scalar_lea.sflag [#allocation6], %s906_s30 }
 0x2d3   : > { %p1547_p12 = pnand %p2076_p9, %p2075_p7 }
 0x2d5   : > { %1734 = dma.done.wait (!%p1547_p12), %s907_s22, 256  }
 0x2d6   : > { %1736 = vsyncadd (!%p1547_p12), %s907_s22, 4294967040  ;;  %p19_p1 = scmp.ge.s32.totalorder %s1908_s29, 4   ;;  %s2077_s18 = smov %s1743_s19 }
 0x2d7   : > { %s2078_s19 = smov %s1747_s20  ;;  %s2079_s20 = smov %s1924_s27 }
 0x2d8   : > { %s2080_s21 = smov %s1908_s29  ;;  %21 = sbr.rel (!%p19_p1) target bundleno = 6 (0x6), region = 97 }
 0x2df   :  { %912 = vsyncpa [#allocation5], 1 }
 0x2e0   :  { %914 = vsyncpa [#allocation5 + $0x1], 1 }
 0x2e1   :  { %915 = vsyncpa [#allocation8], 1 }
 0x2e2   :  { %916 = vsyncpa [#allocation6], 1 }
 0x2e3   :  { %918 = vsyncpa [#allocation6 + $0x1], 1 }

</bundles_post_ra>
